<compile_context>
chip_gen: v6e
topology: v6e:2x2x1
jax: 0.10.0
libtpu: 0.0.40
codegen_flags: <defaults>
</compile_context>

<pallas_src>
import math
import functools

import jax
import jax.numpy as jnp
from jax.experimental import pallas as pl
from jax.experimental.pallas import tpu as pltpu


def _round_up(a, b):
    return (a + b - 1) // b * b


def _gmm_logprob_vpu_kernel(xt_ref, mt_ref, ist_ref, c_ref, o_ref, lp_ref, *,
                            n_components):
    """Stable (x-m)*inv_s form, samples on lanes, packed (K, TN) epilogue.

    xt_ref:  (D, TN)  transposed sample tile
    mt_ref:  (D, K)   component means, transposed
    ist_ref: (D, K)   sqrt(0.5)/sigma, transposed (the -0.5 factor is folded in)
    c_ref:   (K, 1)   log_mix_k - sum_d log(sd_kd) - D/2*log(2*pi)
    o_ref:   (1, TN)  output log p(x), lane-dense
    lp_ref:  (K, TN)  VMEM scratch holding per-component log-probs (sublane-dense)
    """
    xt = xt_ref[...].astype(jnp.float32)                        # (D, TN)
    for k in range(n_components):                               # static unroll, K small
        z = (xt - mt_ref[:, k:k + 1]) * ist_ref[:, k:k + 1]     # (D, TN) pure VPU
        lp_ref[k:k + 1, :] = c_ref[k:k + 1, :] - jnp.sum(z * z, axis=0, keepdims=True)
    lp = lp_ref[...]                                            # (K, TN) sublane-dense
    m = jnp.max(lp, axis=0, keepdims=True)                      # (1, TN)
    s = jnp.sum(jnp.exp(lp - m), axis=0, keepdims=True)         # single EUP pass
    o_ref[...] = (m + jnp.log(s)).astype(o_ref.dtype)


def _gmm_logprob_mxu_kernel(xt_ref, w_ref, c_ref, o_ref):
    """Sufficient-statistics form: lp = W @ [x*x; x] + c on the MXU.

    xt_ref: (D, TN)    transposed sample tile
    w_ref:  (Kp, 2D)   [A | B] with A = -0.5/sigma^2, B = mu/sigma^2 (rows padded to Kp)
    c_ref:  (Kp, 1)    per-component constant (padded rows hold -1e30)
    o_ref:  (1, TN)    output log p(x)
    """
    xt = xt_ref[...].astype(jnp.float32)                        # (D, TN)
    feats = jnp.concatenate([xt * xt, xt], axis=0)              # (2D, TN)
    lp = jnp.dot(w_ref[...], feats,
                 preferred_element_type=jnp.float32)            # (Kp, TN) on MXU
    lp = lp + c_ref[...]                                        # lane-broadcast
    m = jnp.max(lp, axis=0, keepdims=True)
    s = jnp.sum(jnp.exp(lp - m), axis=0, keepdims=True)
    o_ref[...] = (m + jnp.log(s)).astype(o_ref.dtype)


def gmm_log_prob(x, means, scales, weights, *, tile_n=None, use_mxu=False):
    """Mixture-of-Gaussians log_prob via a Pallas TPU kernel.

    x:       (N, D) evaluation points (f32 or bf16; upcast to f32 in-kernel)
    means:   (K, D) component means
    scales:  (K, D) component stddevs (> 0)
    weights: (K,)   unnormalized mixture weights
    returns: (N,)   log p(x), float32
    """
    N, D = x.shape
    K = means.shape[0]

    means = means.astype(jnp.float32)
    scales = scales.astype(jnp.float32)
    weights = weights.astype(jnp.float32)

    # Hoisted per-component constants (tiny K*D work, done once in the wrapper).
    log_mix = jnp.log(weights) - jnp.log(jnp.sum(weights))                 # (K,)
    log_norm = (log_mix - jnp.sum(jnp.log(scales), axis=-1)
                - 0.5 * D * math.log(2.0 * math.pi))                       # (K,)

    # Tile choice: amortize the ~0.35us/step grid overhead with big lane tiles,
    # but keep >=2 parallel tiles when N allows so both v7x TensorCores get work.
    if tile_n is None:
        tile_n = min(8192, max(256, _round_up(pl.cdiv(N, 2), 128)))
    n_tiles = pl.cdiv(N, tile_n)
    Np = n_tiles * tile_n

    # Samples on lanes: (N, D) -> (D, Np).  allow_input_fusion lets XLA fuse this
    # relayout into the pallas operand instead of a separate HBM round-trip.
    # TODO(synk): a fused producer could emit x in (D, N) layout directly.
    xt = jnp.transpose(x)                                                  # (D, N)
    if Np != N:
        xt = jnp.pad(xt, ((0, 0), (0, Np - N)))

    out_shape = jax.ShapeDtypeStruct((1, Np), jnp.float32)
    x_spec = pl.BlockSpec((D, tile_n), lambda i: (0, i))
    o_spec = pl.BlockSpec((1, tile_n), lambda i: (0, i))                   # lane-dense stores

    if use_mxu:
        # Sufficient statistics: lp_k(x) = sum_d A_kd x_d^2 + B_kd x_d + c_k.
        inv_var = 1.0 / (scales * scales)                                  # (K, D)
        a_coef = -0.5 * inv_var
        b_coef = means * inv_var
        c = log_norm - 0.5 * jnp.sum(means * means * inv_var, axis=-1)     # (K,)
        Kp = _round_up(K, 8)                                               # sublane-align rows
        w = jnp.concatenate([a_coef, b_coef], axis=-1)                     # (K, 2D)
        w = jnp.pad(w, ((0, Kp - K), (0, 0)))
        c = jnp.pad(c, (0, Kp - K), constant_values=-1e30).reshape(Kp, 1)

        out = pl.pallas_call(
            _gmm_logprob_mxu_kernel,
            out_shape=out_shape,
            grid=(n_tiles,),
            in_specs=[x_spec,
                      pl.BlockSpec((Kp, 2 * D), lambda i: (0, 0)),
                      pl.BlockSpec((Kp, 1), lambda i: (0, 0))],
            out_specs=o_spec,
            compiler_params=pltpu.CompilerParams(
                dimension_semantics=("parallel",),
                allow_input_fusion=[True, False, False]),
        )(xt, w, c)
    else:
        means_t = means.T                                                  # (D, K)
        inv_scales_t = (math.sqrt(0.5) / scales).T                         # (D, K), -0.5 folded
        c = log_norm.reshape(K, 1)                                         # (K, 1)
        kernel = functools.partial(_gmm_logprob_vpu_kernel, n_components=K)

        out = pl.pallas_call(
            kernel,
            out_shape=out_shape,
            grid=(n_tiles,),
            in_specs=[x_spec,
                      pl.BlockSpec((D, K), lambda i: (0, 0)),
                      pl.BlockSpec((D, K), lambda i: (0, 0)),
                      pl.BlockSpec((K, 1), lambda i: (0, 0))],
            out_specs=o_spec,
            scratch_shapes=[pltpu.VMEM((K, tile_n), jnp.float32)],
            compiler_params=pltpu.CompilerParams(
                dimension_semantics=("parallel",),
                allow_input_fusion=[True, False, False, False]),
        )(xt, means_t, inv_scales_t, c)

    return out[0, :N]


def gmm_log_prob_ref(x, means, scales, weights):
    """Pure-JAX reference (mirrors torch MixtureSameFamily.log_prob)."""
    log_mix = jnp.log(weights) - jnp.log(jnp.sum(weights))                   # (K,)
    z = (x[:, None, :] - means[None, :, :]) / scales[None, :, :]             # (N,K,D)
    comp_lp = (-0.5 * jnp.sum(z * z, axis=-1)
               - jnp.sum(jnp.log(scales), axis=-1)[None, :]
               - 0.5 * x.shape[-1] * math.log(2.0 * math.pi))                # (N,K)
    return jax.scipy.special.logsumexp(comp_lp + log_mix[None, :], axis=-1)  # (N,)


if __name__ == "__main__":
    # Module config (GMM_WIP(n_components, dim), default weights = ones).
    n_components = 4
    dim = 8
    N = 2000   # ragged vs tile_n -> exercises cdiv + zero padding; 2 parallel tiles

    key = jax.random.PRNGKey(0)
    k_means, k_scales, k_x = jax.random.split(key, 3)

    # Deterministic stand-ins for torch.randn / torch.rand in forward():
    means = jax.random.normal(k_means, (n_components, dim), dtype=jnp.float32)
    scales = jax.random.uniform(k_scales, (n_components, dim), dtype=jnp.float32,
                                minval=0.1, maxval=1.0)    # torch.rand-ish, away from 0
    weights = jnp.ones((n_components,), dtype=jnp.float32)  # default self.weights

    x = jax.random.normal(k_x, (N, dim), dtype=jnp.float32)

    # TODO(synk): forward() returns a Distribution object; we expose its log_prob
    # (the actual numerical hot path) as the Pallas kernel.
    ref = gmm_log_prob_ref(x, means, scales, weights)

    # Default path: packed VPU form (numerically matches the stable reference).
    out = jax.block_until_ready(gmm_log_prob(x, means, scales, weights))
    assert out.shape == (N,)
    assert jnp.allclose(out, ref, atol=1e-4, rtol=1e-4), (
        f"VPU path max err {jnp.max(jnp.abs(out - ref))}")

    # MXU sufficient-statistics path (review: preferred on v6e/v7x; benchmark).
    # The expanded quadratic can cancel when |x| >> sigma, so the check is looser.
    out_mxu = jax.block_until_ready(
        gmm_log_prob(x, means, scales, weights, use_mxu=True))
    assert out_mxu.shape == (N,)
    assert jnp.allclose(out_mxu, ref, atol=1e-2, rtol=1e-3), (
        f"MXU path max err {jnp.max(jnp.abs(out_mxu - ref))}")

    print("KERNEL_OK")
</pallas_src>

<mosaic_0001>
module attributes {stable_mosaic.version = 11 : i64} {
  func.func @_gmm_logprob_vpu_kernel(%arg0: i32, %arg1: memref<8x1024xf32, #tpu.memory_space<vmem>>, %arg2: memref<8x4xf32, #tpu.memory_space<vmem>>, %arg3: memref<8x4xf32, #tpu.memory_space<vmem>>, %arg4: memref<4x1xf32, #tpu.memory_space<vmem>>, %arg5: memref<1x1024xf32, #tpu.memory_space<vmem>>, %arg6: memref<4x1024xf32, #tpu.memory_space<vmem>>) attributes {dimension_semantics = [#tpu.dimension_semantics<parallel>], iteration_bounds = array<i64: 2>, scalar_prefetch = 0 : i64, scratch_operands = 1 : i64, tpu.core_type = #tpu.core_type<tc>, window_params = [{transform_indices = @transform_0, window_bounds = array<i64: 8, 1024>}, {pipeline_mode = #tpu.pipeline_mode<synchronous>, transform_indices = @transform_1, window_bounds = array<i64: 8, 4>}, {pipeline_mode = #tpu.pipeline_mode<synchronous>, transform_indices = @transform_2, window_bounds = array<i64: 8, 4>}, {pipeline_mode = #tpu.pipeline_mode<synchronous>, transform_indices = @transform_3, window_bounds = array<i64: 4, 1>}, {transform_indices = @transform_4, window_bounds = array<i64: 1, 1024>}]} {
    %c0 = arith.constant 0 : index
    %c0_0 = arith.constant 0 : index
    %0 = vector.load %arg1[%c0, %c0_0] : memref<8x1024xf32, #tpu.memory_space<vmem>>, vector<8x1024xf32>
    %c0_1 = arith.constant 0 : index
    %c0_2 = arith.constant 0 : index
    %1 = vector.load %arg2[%c0_1, %c0_2] : memref<8x4xf32, #tpu.memory_space<vmem>>, vector<8x1xf32>
    %2 = vector.broadcast %1 : vector<8x1xf32> to vector<8x1024xf32>
    %3 = arith.subf %0, %2 : vector<8x1024xf32>
    %c0_3 = arith.constant 0 : index
    %c0_4 = arith.constant 0 : index
    %4 = vector.load %arg3[%c0_3, %c0_4] : memref<8x4xf32, #tpu.memory_space<vmem>>, vector<8x1xf32>
    %5 = vector.broadcast %4 : vector<8x1xf32> to vector<8x1024xf32>
    %6 = arith.mulf %3, %5 : vector<8x1024xf32>
    %c0_5 = arith.constant 0 : index
    %c0_6 = arith.constant 0 : index
    %7 = vector.load %arg4[%c0_5, %c0_6] : memref<4x1xf32, #tpu.memory_space<vmem>>, vector<1x1xf32>
    %8 = arith.mulf %6, %6 : vector<8x1024xf32>
    %cst = arith.constant dense<0.000000e+00> : vector<1024xf32>
    %9 = vector.multi_reduction <add>, %8, %cst [0] : vector<8x1024xf32> to vector<1024xf32>
    %10 = vector.shape_cast %9 : vector<1024xf32> to vector<1x1024xf32>
    %11 = vector.broadcast %7 : vector<1x1xf32> to vector<1x1024xf32>
    %12 = arith.subf %11, %10 : vector<1x1024xf32>
    %c0_7 = arith.constant 0 : index
    %c0_8 = arith.constant 0 : index
    %13 = vector.load %arg6[%c0_7, %c0_8] : memref<4x1024xf32, #tpu.memory_space<vmem>>, vector<1x1024xf32>
    tpu.vector_store %arg6[%c0_7, %c0_8], %12 {strides = array<i32>} : memref<4x1024xf32, #tpu.memory_space<vmem>>, vector<1x1024xf32>,
    %c0_9 = arith.constant 0 : index
    %c1 = arith.constant 1 : index
    %14 = vector.load %arg2[%c0_9, %c1] : memref<8x4xf32, #tpu.memory_space<vmem>>, vector<8x1xf32>
    %15 = vector.broadcast %14 : vector<8x1xf32> to vector<8x1024xf32>
    %16 = arith.subf %0, %15 : vector<8x1024xf32>
    %c0_10 = arith.constant 0 : index
    %c1_11 = arith.constant 1 : index
    %17 = vector.load %arg3[%c0_10, %c1_11] : memref<8x4xf32, #tpu.memory_space<vmem>>, vector<8x1xf32>
    %18 = vector.broadcast %17 : vector<8x1xf32> to vector<8x1024xf32>
    %19 = arith.mulf %16, %18 : vector<8x1024xf32>
    %c1_12 = arith.constant 1 : index
    %c0_13 = arith.constant 0 : index
    %20 = vector.load %arg4[%c1_12, %c0_13] : memref<4x1xf32, #tpu.memory_space<vmem>>, vector<1x1xf32>
    %21 = arith.mulf %19, %19 : vector<8x1024xf32>
    %cst_14 = arith.constant dense<0.000000e+00> : vector<1024xf32>
    %22 = vector.multi_reduction <add>, %21, %cst_14 [0] : vector<8x1024xf32> to vector<1024xf32>
    %23 = vector.shape_cast %22 : vector<1024xf32> to vector<1x1024xf32>
    %24 = vector.broadcast %20 : vector<1x1xf32> to vector<1x1024xf32>
    %25 = arith.subf %24, %23 : vector<1x1024xf32>
    %c1_15 = arith.constant 1 : index
    %c0_16 = arith.constant 0 : index
    %26 = vector.load %arg6[%c1_15, %c0_16] : memref<4x1024xf32, #tpu.memory_space<vmem>>, vector<1x1024xf32>
    tpu.vector_store %arg6[%c1_15, %c0_16], %25 {strides = array<i32>} : memref<4x1024xf32, #tpu.memory_space<vmem>>, vector<1x1024xf32>,
    %c0_17 = arith.constant 0 : index
    %c2 = arith.constant 2 : index
    %27 = vector.load %arg2[%c0_17, %c2] : memref<8x4xf32, #tpu.memory_space<vmem>>, vector<8x1xf32>
    %28 = vector.broadcast %27 : vector<8x1xf32> to vector<8x1024xf32>
    %29 = arith.subf %0, %28 : vector<8x1024xf32>
    %c0_18 = arith.constant 0 : index
    %c2_19 = arith.constant 2 : index
    %30 = vector.load %arg3[%c0_18, %c2_19] : memref<8x4xf32, #tpu.memory_space<vmem>>, vector<8x1xf32>
    %31 = vector.broadcast %30 : vector<8x1xf32> to vector<8x1024xf32>
    %32 = arith.mulf %29, %31 : vector<8x1024xf32>
    %c2_20 = arith.constant 2 : index
    %c0_21 = arith.constant 0 : index
    %33 = vector.load %arg4[%c2_20, %c0_21] : memref<4x1xf32, #tpu.memory_space<vmem>>, vector<1x1xf32>
    %34 = arith.mulf %32, %32 : vector<8x1024xf32>
    %cst_22 = arith.constant dense<0.000000e+00> : vector<1024xf32>
    %35 = vector.multi_reduction <add>, %34, %cst_22 [0] : vector<8x1024xf32> to vector<1024xf32>
    %36 = vector.shape_cast %35 : vector<1024xf32> to vector<1x1024xf32>
    %37 = vector.broadcast %33 : vector<1x1xf32> to vector<1x1024xf32>
    %38 = arith.subf %37, %36 : vector<1x1024xf32>
    %c2_23 = arith.constant 2 : index
    %c0_24 = arith.constant 0 : index
    %39 = vector.load %arg6[%c2_23, %c0_24] : memref<4x1024xf32, #tpu.memory_space<vmem>>, vector<1x1024xf32>
    tpu.vector_store %arg6[%c2_23, %c0_24], %38 {strides = array<i32>} : memref<4x1024xf32, #tpu.memory_space<vmem>>, vector<1x1024xf32>,
    %c0_25 = arith.constant 0 : index
    %c3 = arith.constant 3 : index
    %40 = vector.load %arg2[%c0_25, %c3] : memref<8x4xf32, #tpu.memory_space<vmem>>, vector<8x1xf32>
    %41 = vector.broadcast %40 : vector<8x1xf32> to vector<8x1024xf32>
    %42 = arith.subf %0, %41 : vector<8x1024xf32>
    %c0_26 = arith.constant 0 : index
    %c3_27 = arith.constant 3 : index
    %43 = vector.load %arg3[%c0_26, %c3_27] : memref<8x4xf32, #tpu.memory_space<vmem>>, vector<8x1xf32>
    %44 = vector.broadcast %43 : vector<8x1xf32> to vector<8x1024xf32>
    %45 = arith.mulf %42, %44 : vector<8x1024xf32>
    %c3_28 = arith.constant 3 : index
    %c0_29 = arith.constant 0 : index
    %46 = vector.load %arg4[%c3_28, %c0_29] : memref<4x1xf32, #tpu.memory_space<vmem>>, vector<1x1xf32>
    %47 = arith.mulf %45, %45 : vector<8x1024xf32>
    %cst_30 = arith.constant dense<0.000000e+00> : vector<1024xf32>
    %48 = vector.multi_reduction <add>, %47, %cst_30 [0] : vector<8x1024xf32> to vector<1024xf32>
    %49 = vector.shape_cast %48 : vector<1024xf32> to vector<1x1024xf32>
    %50 = vector.broadcast %46 : vector<1x1xf32> to vector<1x1024xf32>
    %51 = arith.subf %50, %49 : vector<1x1024xf32>
    %c3_31 = arith.constant 3 : index
    %c0_32 = arith.constant 0 : index
    %52 = vector.load %arg6[%c3_31, %c0_32] : memref<4x1024xf32, #tpu.memory_space<vmem>>, vector<1x1024xf32>
    tpu.vector_store %arg6[%c3_31, %c0_32], %51 {strides = array<i32>} : memref<4x1024xf32, #tpu.memory_space<vmem>>, vector<1x1024xf32>,
    %c0_33 = arith.constant 0 : index
    %c0_34 = arith.constant 0 : index
    %53 = vector.load %arg6[%c0_33, %c0_34] : memref<4x1024xf32, #tpu.memory_space<vmem>>, vector<4x1024xf32>
    %cst_35 = arith.constant dense<0xFF800000> : vector<1024xf32>
    %54 = vector.multi_reduction <maximumf>, %53, %cst_35 [0] : vector<4x1024xf32> to vector<1024xf32>
    %55 = vector.shape_cast %54 : vector<1024xf32> to vector<1x1024xf32>
    %56 = vector.broadcast %55 : vector<1x1024xf32> to vector<4x1024xf32>
    %57 = arith.subf %53, %56 : vector<4x1024xf32>
    %58 = math.exp %57 : vector<4x1024xf32>
    %cst_36 = arith.constant dense<0.000000e+00> : vector<1024xf32>
    %59 = vector.multi_reduction <add>, %58, %cst_36 [0] : vector<4x1024xf32> to vector<1024xf32>
    %60 = vector.shape_cast %59 : vector<1024xf32> to vector<1x1024xf32>
    %61 = math.log %60 : vector<1x1024xf32>
    %62 = arith.addf %55, %61 : vector<1x1024xf32>
    %c0_37 = arith.constant 0 : index
    %c0_38 = arith.constant 0 : index
    %63 = vector.load %arg5[%c0_37, %c0_38] : memref<1x1024xf32, #tpu.memory_space<vmem>>, vector<1x1024xf32>
    tpu.vector_store %arg5[%c0_37, %c0_38], %62 {strides = array<i32>} : memref<1x1024xf32, #tpu.memory_space<vmem>>, vector<1x1024xf32>,
    return
  }
  func.func @transform_0(%arg0: i32) -> (i32, i32) {
    %c0_i32 = arith.constant 0 : i32
    %c0_i32_0 = arith.constant 0 : i32
    return %c0_i32, %arg0 : i32, i32
  }
  func.func @transform_1(%arg0: i32) -> (i32, i32) {
    %c0_i32 = arith.constant 0 : i32
    %c0_i32_0 = arith.constant 0 : i32
    %c0_i32_1 = arith.constant 0 : i32
    return %c0_i32, %c0_i32_0 : i32, i32
  }
  func.func @transform_2(%arg0: i32) -> (i32, i32) {
    %c0_i32 = arith.constant 0 : i32
    %c0_i32_0 = arith.constant 0 : i32
    %c0_i32_1 = arith.constant 0 : i32
    return %c0_i32, %c0_i32_0 : i32, i32
  }
  func.func @transform_3(%arg0: i32) -> (i32, i32) {
    %c0_i32 = arith.constant 0 : i32
    %c0_i32_0 = arith.constant 0 : i32
    %c0_i32_1 = arith.constant 0 : i32
    return %c0_i32, %c0_i32_0 : i32, i32
  }
  func.func @transform_4(%arg0: i32) -> (i32, i32) {
    %c0_i32 = arith.constant 0 : i32
    %c0_i32_0 = arith.constant 0 : i32
    return %c0_i32, %arg0 : i32, i32
  }
}

</mosaic_0001>

<bundles_post_ra>
// kernel: tpu_custom_call.1
= control target key start
LH: loop header
LB: loop body
LE: loop exit
PB: predicated region body
PF: predicated region fallthrough
CT: control target
= control target key end

     0   :  { %9 = vsyncpa [#allocation4], 0  ;;  %s2022_s0 = inlined_call_operand.hbm [shape: f32[8,2048], index: 0, kind: input, shape index: {}]   ;;  %s2023_s1 = inlined_call_operand.vmem [shape: f32[8,4], index: 1, kind: input, shape index: {}]   ;;  %s2024_s2 = inlined_call_operand.vmem [shape: f32[8,4], index: 2, kind: input, shape index: {}]   ;;  %s2025_s3 = inlined_call_operand.vmem [shape: f32[4,1], index: 3, kind: input, shape index: {}]   ;;  %s2026_s4 = inlined_call_operand.hbm [shape: f32[1,2048], index: 4, kind: output, shape index: {}]  }
   0x1   :  { %11 = vsyncpa [#allocation4 + $0x1], 0 }
   0x2   :  { %12 = vsyncpa [#allocation5], 0 }
   0x3   :  { %14 = vsyncpa [#allocation5 + $0x1], 0  ;;  %s1422_s15 = smov 0   ;;  %s1424_s16 = smov 0  }
   0x4   :  { %s1426_s17 = smov 0   ;;  %s1428_s18 = smov 0  }
   0x5 LB: > { %s1443_s19 = sadd.s32 4294967295, %s1388_s18   ;;  %s1192_s20 = sadd.s32 4294967294, %s1388_s18   ;;  %s1388_s18 = sphi %s1428_s18, %s2064_s18   ;;  %s1384_s17 = sphi %s1426_s17, %s2063_s17   ;;  %s1380_s16 = sphi %s1424_s16, %s2062_s16   ;;  %s1376_s15 = sphi %s1422_s15, %s2061_s15  }
   0x6   : > { %s1447_s21 = sadd.s32 1, %s1388_s18   ;;  %s27_s22 = sadd.s32 1, %s1384_s17 }
   0x7   : > { %s24_s23 = ssub.s32 %s1388_s18, %s1447_s21  ;;  %p34_p0 = scmp.ne.s32.totalorder %s1384_s17, %s1380_s16 }
   0x8   : > { %p25_p1 = scmp.eq.s32.totalorder %s24_s23, 0  ;;  %p35_p2 = scmp.eq.s32.totalorder %s1388_s18, 0 }
   0x9   : > { %p40_p3 = scmp.ne.s32.totalorder %s1380_s16, %s1376_s15  ;;  %p41_p4 = scmp.eq.s32.totalorder %s1443_s19, 0 }
   0xa   : > { %s1459_s24 = scalar_select %p25_p1, %s1384_s17, %s27_s22  }
   0xb   : > { %p1461_p5 = por %p35_p2, %p34_p0  ;;  %p1465_p6 = por %p41_p4, %p40_p3 }
   0xc   : > { %p127_p7 = scmp.eq.s32.totalorder %s1443_s19, 1  ;;  %p133_p8 = scmp.eq.s32.totalorder %s1192_s20, 1 }
   0xd   : > { %s2030_s26 = scalar_select %p1465_p6, 1, 0 }
   0xe   : > { %p1220_p10 = scmp.lt.s32.totalorder %s1388_s18, 2  ;;  %p1472_p11 = por %p127_p7, %p34_p0 }
   0xf   : > { %p1476_p12 = por %p133_p8, %p40_p3  ;;  %s162_s29 = sand.u32 1, %s1384_s17  }
  0x10   : > { %s2031_s27 = scalar_select %p1472_p11, 1, 0 }
  0x11   : > { %s2032_s28 = scalar_select %p1476_p12, 1, 0 }
  0x12   : > { %s1206_s30 = sshll.u32 %s1388_s18, 10  ;;  %s1195_s5 = sshll.u32 %s162_s29, 6 }
  0x13   : > { %s1485_s8 = scalar_lea.hbm %s2022_s0, %s1206_s30  ;;  %s166_s9 = scalar_lea.vmem [#allocation3], %s1195_s5 }
  0x14   : > { %s174_s10 = sshll.u32 %s166_s9, 4  ;;  %p1489_p13 = pnand %p1220_p10, %p1461_p5  ;;  %s1493_s10 = int_to_ptr.vmem [resolvable:$true] %s174_s10 }
  0x15   : > { %s163_s12 = scalar_lea.sflag [#allocation4], %s162_s29  ;;  %s1296_s13 = scalar_lea.hbm %s1485_s8, 1024 }
  0x16   : > { %p1297_p2 = scmp.ne.s32.totalorder %s1485_s8, %s1296_s13  ;;  %p1298_p3 = pneg %p1489_p13 }
  0x17   : > { %s1301_s22 = scalar_lea.hbm %s2022_s0, 2048  ;;  %p1302_p5 = scmp.lt.s32.totalorder %s1485_s8, %s2022_s0 }
  0x18   : > { %p1299_p4 = pnand %p1298_p3, %p1297_p2  ;;  %p1303_p8 = scmp.lt.s32.totalorder %s1301_s22, %s1296_s13 }
  0x1a   : > { %p1300_p7 = pneg %p1299_p4  ;;  %p1304_p10 = por %p1303_p8, %p1302_p5 }
  0x1c   : > { %p1305_p9 = pnand %p1304_p10, %p1300_p7 }
  0x1e   : > { %1308 = shalt.err (!%p1305_p9)
}
  0x1f   : > { %s1309_s29 = scalar_lea.vmem %s1493_s10, 1024  ;;  %s1390_s30 = smov [#allocation3]  }
  0x20   : > { %p1310_p0 = scmp.ne.s32.totalorder %s1493_s10, %s1309_s29  ;;  %s1314_s5 = sshll.u32 %s1390_s30, 4  ;;  %s1315_s5 = int_to_ptr.vmem [resolvable:$false] %s1314_s5 }
  0x21   : > { %s1316_s6 = scalar_lea.vmem %s1315_s5, 2048  ;;  %p1317_p4 = scmp.lt.s32.totalorder %s1493_s10, %s1315_s5 }
  0x22   : > { %p1312_p1 = pnand %p1310_p0, %p1298_p3  ;;  %p1318_p12 = scmp.lt.s32.totalorder %s1316_s6, %s1309_s29 }
  0x24   : > { %p1313_p2 = pneg %p1312_p1  ;;  %p1319_p11 = por %p1318_p12, %p1317_p4 }
  0x26   : > { %p1320_p6 = pnand %p1319_p11, %p1313_p2 }
  0x28   : > { %1323 = shalt.err (!%p1320_p6)
}
  0x29   : > { %1215 = dma.hbm_to_vmem [thread:$0]  (!%p1489_p13), %s1485_s8, 1024, %s1493_s10, %s163_s12  }
  0x2a   : > { %p2034_p9 = scmp.lt.s32.totalorder %s1388_s18, 3  ;;  %p2035_p7 = scmp.ge.s32.totalorder %s1388_s18, 1 }
  0x2c   : > { %p180_p0 = pnand %p2035_p7, %p2034_p9 }
  0x2d   : > { %s1520_s7 = sand.u32 (!%p180_p0), 1, %s1380_s16   ;;  %p2036_p6 = scmp.ne.s32.totalorder (!%p180_p0), %s2030_s26, 0 }
  0x2e   : > { %183 = sbr.rel (%p180_p0) target bundleno = 390 (0x186), region = 36  ;;  %s1199_s9 = sshll.u32 (!%p180_p0), %s1520_s7, 6 }
  0x2f   : > { %s186_s13 = scalar_lea.sflag (!%p180_p0), [#allocation4], %s1520_s7  ;;  %s1524_s14 = scalar_lea.vmem (!%p180_p0), [#allocation3], %s1199_s9 }
  0x33   : > { %1367 = dma.done.wait (%p2036_p6), %s186_s13, 1024  }
  0x34   : > { %1369 = vsyncadd (%p2036_p6), %s186_s13, 4294966272  ;;  %v1391_v0 = vmov 2   ;;  %v1392_v1 = vmov 0   ;;  %v539_v2 = vld [vmem:[%s2023_s1] sm:$0xff]  ;;  %v1393_v3 = vmov 3   ;;  %v1394_v4 = vmov 1  }
  0x35   : > { %1261 = vset.pattern.permute.xlu1 %v1391_v0  ;;  %1259 = vset.pattern.permute.xlu0 %v1392_v1  ;;  %v395_v5 = vld [vmem:[%s2024_s2] sm:$0xff]  ;;  %v1395_v10 = vmov 1966171168   ;;  %v337_v12 = vlaneseq  ;;  %v1552_v16 = vld [vmem:[%s1524_s14 + $0x8] sm:$0xff]  ;;  %v1555_v17 = vld [vmem:[%s1524_s14 + $0x10] sm:$0xff]  ;;  %vm871_vm0 = vcmask 1043456  }
  0x36   : > { %542 = vperm.xlu1 %1261, %v539_v2   ;;  %227 = vperm.xlu0 %1259, %v539_v2   ;;  %v567_v6 = vld [vmem:[%s2025_s3 + $0x2] sm:$0x1]  ;;  %v252_v7 = vld [vmem:[%s2025_s3] sm:$0x1]  ;;  %v409_v8 = vld [vmem:[%s2025_s3 + $0x1] sm:$0x1]  ;;  %v335_v11 = vunpack.c.l.s4 %v1395_v10 }
  0x37   : > { %v725_v9 = vld [vmem:[%s2025_s3 + $0x3] sm:$0x1]  ;;  %v338_v14 = vshrl.u32 %v337_v12, 7  ;;  %v1558_v18 = vld [vmem:[%s1524_s14 + $0x18] sm:$0xff]  ;;  %v1566_v21 = vld [vmem:[%s1524_s14 + $0x28] sm:$0xff]  ;;  %s1200_s6 = sshll.u32 %s1520_s7, 3 }
  0x38   : > { %v336_v13 = vunpack.c.0.s8 %v335_v11  ;;  %v1549_v15 = vld [vmem:[%s1524_s14] sm:$0xff]  ;;  %v1569_v22 = vld [vmem:[%s1524_s14 + $0x30] sm:$0xff]  ;;  %v1572_v23 = vld [vmem:[%s1524_s14 + $0x38] sm:$0xff]  ;;  %s1207_s9 = sshll.u32 %s1443_s19, 7  ;;  %s213_s13 = scalar_lea.vmem [#allocation6], %s1200_s6 }
  0x39   : > { %v1561_v19 = vld [vmem:[%s1524_s14 + $0x20] sm:$0xff]  ;;  %s1122_s14 = sshll.u32 %s213_s13, 4  ;;  %s1120_s11 = scalar_lea.hbm %s2026_s4, %s1207_s9  ;;  %s1123_s14 = int_to_ptr.vmem [resolvable:$true] %s1122_s14 }
  0x3a   : > { %1262 = vset.pattern.permute.xlu1 %v1393_v3  ;;  %1260 = vset.pattern.permute.xlu0 %v1394_v4  ;;  %v1576_v25 = vsub.s32 %v336_v13, %v338_v14  ;;  %s1108_s12 = scalar_lea.sflag [#allocation5], %s1520_s7  ;;  %s1324_s26 = scalar_lea.vmem %s1123_s14, 128 }
  0x3b   : > { %700 = vperm.xlu1 %1262, %v539_v2   ;;  %384 = vperm.xlu0 %1260, %v539_v2   ;;  %p1325_p11 = scmp.ne.s32.totalorder %s1123_s14, %s1324_s26  ;;  %p2058_p12 = scmp.ne.s32.totalorder %s2031_s27, 0 }
  0x3c   : > { %s1396_s20 = smov [#allocation6]  }
  0x3d   : > { %p1326_p13 = pnand %p1325_p11, %p2058_p12  ;;  %s1328_s22 = sshll.u32 %s1396_s20, 4  ;;  %s1329_s22 = int_to_ptr.vmem [resolvable:$false] %s1328_s22 }
  0x3e   : > { %s1330_s19 = scalar_lea.vmem %s1329_s22, 256  ;;  %p1331_p3 = scmp.lt.s32.totalorder %s1123_s14, %s1329_s22 }
  0x3f   : > { %1263 = vset.pattern.permute.xlu1 %v1392_v1  ;;  %398 = vperm.xlu0 %1260, %v395_v5   ;;  %p1327_p1 = pneg %p1326_p13  ;;  %p1332_p5 = scmp.lt.s32.totalorder %s1330_s19, %s1324_s26 }
  0x40   : > { %241 = vperm.xlu1 %1263, %v395_v5  }
  0x41   : > { %p1333_p8 = por %p1332_p5, %p1331_p3 }
  0x43   : > { %1265 = vset.pattern.permute.xlu0 %v1393_v3  ;;  %p1334_p10 = pnand %p1333_p8, %p1327_p1 }
  0x44   : > { %1264 = vset.pattern.permute.xlu1 %v1391_v0  ;;  %714 = vperm.xlu0 %1265, %v395_v5  }
  0x45   : > { %556 = vperm.xlu1 %1264, %v395_v5  }
  0x48   : > { %1267 = vset.pattern.permute.xlu0 %v1392_v1 }
  0x49   : > { %1266 = vset.pattern.permute.xlu1 %v1392_v1  ;;  %626 = vperm.xlu0 %1267, %v567_v6  }
  0x4a   : > { %311 = vperm.xlu1 %1266, %v252_v7  }
  0x4e   : > { %468 = vperm.xlu1 %1266, %v409_v8  }
  0x52   : > { %784 = vperm.xlu1 %1266, %v725_v9  }
  0xb1   : > { %v1563_v20 = vpop.permute.xlu1 %542  ;;  %v1574_v24 = vpop.permute.xlu0 %227 }
  0xb2   : > { %v545_v26 = vsub.f32 %v1549_v15, %v1563_v20  ;;  %v546_v27 = vsub.f32 %v1552_v16, %v1563_v20  ;;  %v547_v28 = vsub.f32 %v1555_v17, %v1563_v20  ;;  %v548_v29 = vsub.f32 %v1558_v18, %v1563_v20 }
  0xb3   : > { %v549_v30 = vsub.f32 %v1561_v19, %v1563_v20  ;;  %v550_v31 = vsub.f32 %v1566_v21, %v1563_v20  ;;  %v551_v32 = vsub.f32 %v1569_v22, %v1563_v20  ;;  %v230_v34 = vsub.f32 %v1549_v15, %v1574_v24 }
  0xb4   : > { %v231_v35 = vsub.f32 %v1552_v16, %v1574_v24  ;;  %v232_v36 = vsub.f32 %v1555_v17, %v1574_v24  ;;  %v233_v37 = vsub.f32 %v1558_v18, %v1574_v24  ;;  %v234_v38 = vsub.f32 %v1561_v19, %v1574_v24 }
  0xb5   : > { %v235_v39 = vsub.f32 %v1566_v21, %v1574_v24  ;;  %v236_v40 = vsub.f32 %v1569_v22, %v1574_v24  ;;  %v237_v41 = vsub.f32 %v1572_v23, %v1574_v24 }
  0xb6   : > { %v1610_v42 = vpop.permute.xlu1 %700  ;;  %v385_v43 = vpop.permute.xlu0 %384 }
  0xb7   : > { %v703_v44 = vsub.f32 %v1549_v15, %v1610_v42  ;;  %v704_v45 = vsub.f32 %v1552_v16, %v1610_v42  ;;  %v705_v46 = vsub.f32 %v1555_v17, %v1610_v42  ;;  %v706_v47 = vsub.f32 %v1558_v18, %v1610_v42 }
  0xb8   : > { %v707_v48 = vsub.f32 %v1561_v19, %v1610_v42  ;;  %v708_v49 = vsub.f32 %v1566_v21, %v1610_v42  ;;  %v709_v50 = vsub.f32 %v1569_v22, %v1610_v42  ;;  %v710_v51 = vsub.f32 %v1572_v23, %v1610_v42 }
  0xb9   : > { %v387_v52 = vsub.f32 %v1549_v15, %v385_v43  ;;  %v388_v53 = vsub.f32 %v1552_v16, %v385_v43  ;;  %v389_v54 = vsub.f32 %v1555_v17, %v385_v43  ;;  %v390_v55 = vsub.f32 %v1558_v18, %v385_v43 }
  0xba   : > { %v391_v56 = vsub.f32 %v1561_v19, %v385_v43  ;;  %v392_v57 = vsub.f32 %v1566_v21, %v385_v43  ;;  %v393_v58 = vsub.f32 %v1569_v22, %v385_v43  ;;  %v394_v59 = vsub.f32 %v1572_v23, %v385_v43  ;;  %v399_v60 = vpop.permute.xlu0 %398 }
  0xbb   : > { %v401_v61 = vmul.f32 %v399_v60, %v387_v52  ;;  %v402_v62 = vmul.f32 %v399_v60, %v388_v53  ;;  %v403_v63 = vmul.f32 %v399_v60, %v389_v54  ;;  %v404_v0 = vmul.f32 %v399_v60, %v390_v55 }
  0xbc   : > { %v405_v1 = vmul.f32 %v399_v60, %v391_v56  ;;  %v406_v2 = vmul.f32 %v399_v60, %v392_v57  ;;  %v407_v3 = vmul.f32 %v399_v60, %v393_v58  ;;  %v408_v4 = vmul.f32 %v399_v60, %v394_v59 }
  0xbd   : > { %v410_v5 = vmul.f32 %v401_v61, %v401_v61  ;;  %v411_v6 = vmul.f32 %v402_v62, %v402_v62  ;;  %v412_v7 = vmul.f32 %v403_v63, %v403_v63  ;;  %v413_v8 = vmul.f32 %v404_v0, %v404_v0  ;;  %v242_v0 = vpop.permute.xlu1 %241 }
  0xbe   : > { %v414_v9 = vmul.f32 %v405_v1, %v405_v1  ;;  %v415_v10 = vmul.f32 %v406_v2, %v406_v2  ;;  %v416_v11 = vmul.f32 %v407_v3, %v407_v3  ;;  %v417_v12 = vmul.f32 %v408_v4, %v408_v4 }
  0xbf   : > { %v418_v13 = vrot.slane %v410_v5, 4  ;;  %v424_v14 = vrot.slane %v411_v6, 4  ;;  %v430_v43 = vrot.slane %v412_v7, 4  ;;  %v436_v33 = vrot.slane %v413_v8, 4 }
  0xc0   : > { %v442_v52 = vrot.slane %v414_v9, 4  ;;  %v448_v53 = vrot.slane %v415_v10, 4  ;;  %v454_v54 = vrot.slane %v416_v11, 4  ;;  %v460_v55 = vrot.slane %v417_v12, 4 }
  0xc1   : > { %v1636_v56 = vadd.f32 %v418_v13, %v410_v5  ;;  %v1638_v57 = vadd.f32 %v424_v14, %v411_v6  ;;  %v1640_v58 = vadd.f32 %v430_v43, %v412_v7  ;;  %v1642_v59 = vadd.f32 %v436_v33, %v413_v8 }
  0xc2   : > { %v1644_v60 = vadd.f32 %v442_v52, %v414_v9  ;;  %v1646_v61 = vadd.f32 %v448_v53, %v415_v10  ;;  %v1648_v62 = vadd.f32 %v454_v54, %v416_v11  ;;  %v1650_v63 = vadd.f32 %v460_v55, %v417_v12 }
  0xc3   : > { %v420_v1 = vrot.slane %v1636_v56, 2  ;;  %v426_v2 = vrot.slane %v1638_v57, 2  ;;  %v244_v8 = vmul.f32 %v242_v0, %v230_v34  ;;  %v245_v9 = vmul.f32 %v242_v0, %v231_v35 }
  0xc4   : > { %v246_v10 = vmul.f32 %v242_v0, %v232_v36  ;;  %v247_v11 = vmul.f32 %v242_v0, %v233_v37  ;;  %v248_v12 = vmul.f32 %v242_v0, %v234_v38  ;;  %v249_v34 = vmul.f32 %v242_v0, %v235_v39 }
  0xc5   : > { %v250_v35 = vmul.f32 %v242_v0, %v236_v40  ;;  %v251_v36 = vmul.f32 %v242_v0, %v237_v41  ;;  %v253_v13 = vmul.f32 %v244_v8, %v244_v8  ;;  %v254_v14 = vmul.f32 %v245_v9, %v245_v9 }
  0xc6   : > { %v255_v43 = vmul.f32 %v246_v10, %v246_v10  ;;  %v256_v37 = vmul.f32 %v247_v11, %v247_v11  ;;  %v257_v52 = vmul.f32 %v248_v12, %v248_v12  ;;  %v258_v53 = vmul.f32 %v249_v34, %v249_v34  ;;  %v715_v12 = vpop.permute.xlu0 %714 }
  0xc7   : > { %v259_v54 = vmul.f32 %v250_v35, %v250_v35  ;;  %v260_v38 = vmul.f32 %v251_v36, %v251_v36  ;;  %v261_v55 = vrot.slane %v253_v13, 4  ;;  %v267_v7 = vrot.slane %v254_v14, 4 }
  0xc8   : > { %v273_v6 = vrot.slane %v255_v43, 4  ;;  %v279_v39 = vrot.slane %v256_v37, 4  ;;  %v285_v5 = vrot.slane %v257_v52, 4  ;;  %v291_v33 = vrot.slane %v258_v53, 4 }
  0xc9   : > { %v297_v4 = vrot.slane %v259_v54, 4  ;;  %v303_v40 = vrot.slane %v260_v38, 4  ;;  %v1684_v3 = vadd.f32 %v261_v55, %v253_v13  ;;  %v1686_v24 = vadd.f32 %v267_v7, %v254_v14 }
  0xca   : > { %v1688_v41 = vadd.f32 %v273_v6, %v255_v43  ;;  %v1690_v0 = vadd.f32 %v279_v39, %v256_v37  ;;  %v1692_v8 = vadd.f32 %v285_v5, %v257_v52  ;;  %v1694_v9 = vadd.f32 %v291_v33, %v258_v53 }
  0xcb   : > { %v1696_v10 = vadd.f32 %v297_v4, %v259_v54  ;;  %v1698_v11 = vadd.f32 %v303_v40, %v260_v38  ;;  %v263_v34 = vrot.slane %v1684_v3, 2  ;;  %v269_v35 = vrot.slane %v1686_v24, 2 }
  0xcc   : > { %v275_v7 = vrot.slane %v1688_v41, 2  ;;  %v281_v6 = vrot.slane %v1690_v0, 2  ;;  %v287_v36 = vrot.slane %v1692_v8, 2  ;;  %v293_v5 = vrot.slane %v1694_v9, 2 }
  0xcd   : > { %v299_v33 = vrot.slane %v1696_v10, 2  ;;  %v305_v4 = vrot.slane %v1698_v11, 2  ;;  %v717_v13 = vmul.f32 %v715_v12, %v703_v44  ;;  %v718_v14 = vmul.f32 %v715_v12, %v704_v45 }
  0xce   : > { %v719_v43 = vmul.f32 %v715_v12, %v705_v46  ;;  %v720_v37 = vmul.f32 %v715_v12, %v706_v47  ;;  %v721_v52 = vmul.f32 %v715_v12, %v707_v48  ;;  %v722_v44 = vmul.f32 %v715_v12, %v708_v49 }
  0xcf   : > { %v723_v45 = vmul.f32 %v715_v12, %v709_v50  ;;  %v724_v46 = vmul.f32 %v715_v12, %v710_v51  ;;  %v1732_v53 = vmul.f32 %v717_v13, %v717_v13  ;;  %v1734_v54 = vmul.f32 %v718_v14, %v718_v14  ;;  %v557_v50 = vpop.permute.xlu1 %556 }
  0xd0   : > { %v1736_v47 = vmul.f32 %v719_v43, %v719_v43  ;;  %v1738_v38 = vmul.f32 %v720_v37, %v720_v37  ;;  %v1740_v48 = vmul.f32 %v721_v52, %v721_v52  ;;  %v1742_v55 = vmul.f32 %v722_v44, %v722_v44 }
  0xd1   : > { %v1744_v49 = vmul.f32 %v723_v45, %v723_v45  ;;  %v1746_v39 = vmul.f32 %v724_v46, %v724_v46  ;;  %v734_v42 = vrot.slane %v1732_v53, 4  ;;  %v740_v51 = vrot.slane %v1734_v54, 4 }
  0xd2   : > { %v559_v52 = vmul.f32 %v557_v50, %v545_v26  ;;  %v560_v44 = vmul.f32 %v557_v50, %v546_v27  ;;  %v561_v45 = vmul.f32 %v557_v50, %v547_v28  ;;  %v562_v46 = vmul.f32 %v557_v50, %v548_v29 }
  0xd3   : > { %v563_v37 = vmul.f32 %v557_v50, %v549_v30  ;;  %v564_v15 = vmul.f32 %v557_v50, %v550_v31  ;;  %v565_v16 = vmul.f32 %v557_v50, %v551_v32  ;;  %v2037_v17 = vsub.f32 %v1572_v23, %v1563_v20 }
  0xd4   : > { %v1780_v27 = vmul.f32 %v559_v52, %v559_v52  ;;  %v1782_v18 = vmul.f32 %v560_v44, %v560_v44  ;;  %v1784_v28 = vmul.f32 %v561_v45, %v561_v45  ;;  %v1786_v19 = vmul.f32 %v562_v46, %v562_v46 }
  0xd5   : > { %v566_v26 = vmul.f32 %v557_v50, %v2037_v17  ;;  %v1788_v29 = vmul.f32 %v563_v37, %v563_v37  ;;  %v1790_v21 = vmul.f32 %v564_v15, %v564_v15  ;;  %v1792_v30 = vmul.f32 %v565_v16, %v565_v16 }
  0xd6   : > { %v264_v45 = vadd.f32 %v263_v34, %v1684_v3  ;;  %v270_v46 = vadd.f32 %v269_v35, %v1686_v24  ;;  %v276_v15 = vadd.f32 %v275_v7, %v1688_v41  ;;  %v282_v16 = vadd.f32 %v281_v6, %v1690_v0  ;;  %v312_v6 = vpop.permute.xlu1 %311 }
  0xd7   : > { %v1794_v22 = vmul.f32 %v566_v26, %v566_v26  ;;  %v288_v17 = vadd.f32 %v287_v36, %v1692_v8  ;;  %v294_v26 = vadd.f32 %v293_v5, %v1694_v9  ;;  %v300_v50 = vadd.f32 %v299_v33, %v1696_v10 }
  0xd8   : > { %v306_v52 = vadd.f32 %v305_v4, %v1698_v11  ;;  %v265_v32 = vrot.slane %v264_v45, 1  ;;  %v271_v37 = vrot.slane %v270_v46, 1  ;;  %v277_v23 = vrot.slane %v276_v15, 1 }
  0xd9   : > { %v283_v44 = vrot.slane %v282_v16, 1  ;;  %v289_v20 = vrot.slane %v288_v17, 1  ;;  %v295_v3 = vrot.slane %v294_v26, 1  ;;  %v301_v34 = vrot.slane %v300_v50, 1 }
  0xda   : > { %v307_v24 = vrot.slane %v306_v52, 1  ;;  %v266_v35 = vadd.f32 %v265_v32, %v264_v45  ;;  %v272_v41 = vadd.f32 %v271_v37, %v270_v46  ;;  %v278_v7 = vadd.f32 %v277_v23, %v276_v15 }
  0xdb   : > { %v284_v0 = vadd.f32 %v283_v44, %v282_v16  ;;  %v290_v8 = vadd.f32 %v289_v20, %v288_v17  ;;  %v296_v36 = vadd.f32 %v295_v3, %v294_v26  ;;  %v302_v9 = vadd.f32 %v301_v34, %v300_v50 }
  0xdc   : > { %v308_v5 = vadd.f32 %v307_v24, %v306_v52  ;;  %v314_v10 = vsub.f32 %v312_v6, %v266_v35  ;;  %v315_v33 = vsub.f32 %v312_v6, %v272_v41  ;;  %v316_v11 = vsub.f32 %v312_v6, %v278_v7 }
  0xdd   : > { %v317_v4 = vsub.f32 %v312_v6, %v284_v0  ;;  %v318_v31 = vsub.f32 %v312_v6, %v290_v8  ;;  %v319_v43 = vsub.f32 %v312_v6, %v296_v36  ;;  %v320_v14 = vsub.f32 %v312_v6, %v302_v9 }
  0xde   : > { %v321_v13 = vsub.f32 %v312_v6, %v308_v5  ;;  %v330_v12 = vcombine.low %v314_v10, %v315_v33  ;;  %v421_v23 = vadd.f32 %v420_v1, %v1636_v56  ;;  %v427_v20 = vadd.f32 %v426_v2, %v1638_v57 }
  0xdf   : > { %v331_v40 = vcombine.low %v316_v11, %v317_v4  ;;  %v332_v32 = vcombine.low %v318_v31, %v319_v43  ;;  %v2038_v52 = vrot.slane %v1640_v58, 2  ;;  %v2039_v44 = vrot.slane %v1642_v59, 2  ;;  %v469_v43 = vpop.permute.xlu1 %468 }
  0xe0   : > { %v333_v50 = vcombine.low %v320_v14, %v321_v13  ;;  %v340_v46 = vrot.slane %v330_v12, %v1576_v25  ;;  %v422_v16 = vrot.slane %v421_v23, 1  ;;  %v428_v56 = vrot.slane %v427_v20, 1 }
  0xe1   : > { %v433_v37 = vadd.f32 %v2038_v52, %v1640_v58  ;;  %v439_v45 = vadd.f32 %v2039_v44, %v1642_v59  ;;  %v347_v15 = vrot.slane %v331_v40, %v1576_v25  ;;  %v354_v1 = vrot.slane %v332_v32, %v1576_v25 }
  0xe2   : > { %v361_v57 = vrot.slane %v333_v50, %v1576_v25  ;;  %v423_v31 = vadd.f32 %v422_v16, %v421_v23  ;;  %v429_v58 = vadd.f32 %v428_v56, %v427_v20  ;;  %v2040_v17 = vrot.slane %v1644_v60, 2 }
  0xe3   : > { %v434_v2 = vrot.slane %v433_v37, 1  ;;  %v440_v13 = vrot.slane %v439_v45, 1  ;;  %v362_v14 = vcombine.low %v340_v46, %v347_v15  ;;  %v2041_v40 = vrot.slane %v1646_v61, 2 }
  0xe4   : > { %v445_v59 = vadd.f32 %v2040_v17, %v1644_v60  ;;  %v363_v26 = vcombine.low %v354_v1, %v361_v57  ;;  %v2042_v41 = vrot.slane %v1648_v62, 2  ;;  %v2043_v0 = vrot.slane %v1650_v63, 2 }
  0xe5   : > { %v435_v12 = vadd.f32 %v434_v2, %v433_v37  ;;  %v441_v3 = vadd.f32 %v440_v13, %v439_v45  ;;  %v451_v34 = vadd.f32 %v2041_v40, %v1646_v61  ;;  %v370_v24 = vrot.slane %v362_v14, %v1576_v25 }
  0xe6   : > { %v446_v35 = vrot.slane %v445_v59, 1  ;;  %v457_v7 = vadd.f32 %v2042_v41, %v1648_v62  ;;  %v463_v6 = vadd.f32 %v2043_v0, %v1650_v63  ;;  %v377_v60 = vrot.slane %v363_v26, %v1576_v25 }
  0xe7   : > { %v452_v8 = vrot.slane %v451_v34, 1  ;;  %v471_v36 = vsub.f32 %v469_v43, %v423_v31  ;;  %v472_v9 = vsub.f32 %v469_v43, %v429_v58  ;;  %v473_v61 = vsub.f32 %v469_v43, %v435_v12 }
  0xe8   : > { %v447_v5 = vadd.f32 %v446_v35, %v445_v59  ;;  %v458_v10 = vrot.slane %v457_v7, 1  ;;  %v464_v33 = vrot.slane %v463_v6, 1  ;;  %v378_v11 = vcombine.low %v370_v24, %v377_v60 }
  0xe9   : > { %v453_v4 = vadd.f32 %v452_v8, %v451_v34  ;;  %v474_v23 = vsub.f32 %v469_v43, %v441_v3  ;;  %v487_v20 = vcombine.low %v471_v36, %v472_v9  ;;  %v735_v63 = vadd.f32 %v734_v42, %v1732_v53 }
  0xea   : > { %v459_v32 = vadd.f32 %v458_v10, %v457_v7  ;;  %v465_v50 = vadd.f32 %v464_v33, %v463_v6  ;;  %v475_v62 = vsub.f32 %v469_v43, %v447_v5  ;;  %380 = vst [vmem:[#allocation2] ss:$4 sm:$0xff] %v378_v11  ;;  %v741_v45 = vadd.f32 %v740_v51, %v1734_v54  ;;  %v785_v33 = vpop.permute.xlu1 %784 }
  0xeb   : > { %v476_v52 = vsub.f32 %v469_v43, %v453_v4  ;;  %v488_v37 = vcombine.low %v473_v61, %v474_v23  ;;  %v497_v44 = vrot.slane %v487_v20, %v1576_v25  ;;  %v736_v16 = vrot.slane %v735_v63, 2 }
  0xec   : > { %v477_v46 = vsub.f32 %v469_v43, %v459_v32  ;;  %v478_v15 = vsub.f32 %v469_v43, %v465_v50  ;;  %v2044_v56 = vrot.slane %v1736_v47, 4  ;;  %v742_v53 = vrot.slane %v741_v45, 2 }
  0xed   : > { %v489_v57 = vcombine.low %v475_v62, %v476_v52  ;;  %v504_v2 = vrot.slane %v488_v37, %v1576_v25  ;;  %v2045_v42 = vrot.slane %v1738_v38, 4  ;;  %v737_v31 = vadd.f32 %v736_v16, %v735_v63 }
  0xee   : > { %v747_v1 = vadd.f32 %v2044_v56, %v1736_v47  ;;  %v490_v14 = vcombine.low %v477_v46, %v478_v15  ;;  %v2046_v54 = vrot.slane %v1740_v48, 4  ;;  %v743_v59 = vadd.f32 %v742_v53, %v741_v45 }
  0xef   : > { %v753_v13 = vadd.f32 %v2045_v42, %v1738_v38  ;;  %v511_v43 = vrot.slane %v489_v57, %v1576_v25  ;;  %v519_v17 = vcombine.low %v497_v44, %v504_v2  ;;  %v738_v12 = vrot.slane %v737_v31, 1 }
  0xf0   : > { %v748_v58 = vrot.slane %v747_v1, 2  ;;  %v759_v51 = vadd.f32 %v2046_v54, %v1740_v48  ;;  %v518_v26 = vrot.slane %v490_v14, %v1576_v25  ;;  %v744_v38 = vrot.slane %v743_v59, 1 }
  0xf1   : > { %v754_v47 = vrot.slane %v753_v13, 2  ;;  %v527_v34 = vrot.slane %v519_v17, %v1576_v25  ;;  %v2047_v35 = vrot.slane %v1742_v55, 4  ;;  %v739_v48 = vadd.f32 %v738_v12, %v737_v31 }
  0xf2   : > { %v749_v3 = vadd.f32 %v748_v58, %v747_v1  ;;  %v760_v40 = vrot.slane %v759_v51, 2  ;;  %v520_v7 = vcombine.low %v511_v43, %v518_v26  ;;  %v745_v60 = vadd.f32 %v744_v38, %v743_v59 }
  0xf3   : > { %v755_v24 = vadd.f32 %v754_v47, %v753_v13  ;;  %v765_v41 = vadd.f32 %v2047_v35, %v1742_v55  ;;  %v2048_v9 = vrot.slane %v1744_v49, 4  ;;  %v2049_v4 = vrot.slane %v1746_v39, 4 }
  0xf4   : > { %v750_v0 = vrot.slane %v749_v3, 1  ;;  %v761_v6 = vadd.f32 %v760_v40, %v759_v51  ;;  %v534_v10 = vrot.slane %v520_v7, %v1576_v25  ;;  %v787_v50 = vsub.f32 %v785_v33, %v739_v48 }
  0xf5   : > { %v756_v8 = vrot.slane %v755_v24, 1  ;;  %v766_v36 = vrot.slane %v765_v41, 2  ;;  %v771_v5 = vadd.f32 %v2048_v9, %v1744_v49  ;;  %v777_v55 = vadd.f32 %v2049_v4, %v1746_v39  ;;  %v627_v9 = vpop.permute.xlu0 %626 }
  0xf6   : > { %v751_v61 = vadd.f32 %v750_v0, %v749_v3  ;;  %v762_v11 = vrot.slane %v761_v6, 1  ;;  %v535_v62 = vcombine.low %v527_v34, %v534_v10  ;;  %v788_v37 = vsub.f32 %v785_v33, %v745_v60 }
  0xf7   : > { %v757_v23 = vadd.f32 %v756_v8, %v755_v24  ;;  %v767_v20 = vadd.f32 %v766_v36, %v765_v41  ;;  %v772_v32 = vrot.slane %v771_v5, 2  ;;  %v778_v52 = vrot.slane %v777_v55, 2 }
  0xf8   : > { %v763_v63 = vadd.f32 %v762_v11, %v761_v6  ;;  %v789_v49 = vsub.f32 %v785_v33, %v751_v61  ;;  %538 = vst [vmem:[#allocation2 + $0x1] ss:$4 sm:$0xff] %v535_v62  ;;  %v803_v56 = vcombine.low %v787_v50, %v788_v37  ;;  %v2050_v1 = vrot.slane %v1780_v27, 4 }
  0xf9   : > { %v768_v44 = vrot.slane %v767_v20, 1  ;;  %v773_v45 = vadd.f32 %v772_v32, %v771_v5  ;;  %v790_v46 = vsub.f32 %v785_v33, %v757_v23  ;;  %v779_v15 = vadd.f32 %v778_v52, %v777_v55 }
  0xfa   : > { %v791_v16 = vsub.f32 %v785_v33, %v763_v63  ;;  %v577_v39 = vadd.f32 %v2050_v1, %v1780_v27  ;;  %v2051_v42 = vrot.slane %v1782_v18, 4  ;;  %v813_v31 = vrot.slane %v803_v56, %v1576_v25 }
  0xfb   : > { %v769_v57 = vadd.f32 %v768_v44, %v767_v20  ;;  %v774_v2 = vrot.slane %v773_v45, 1  ;;  %v804_v53 = vcombine.low %v789_v49, %v790_v46  ;;  %v780_v14 = vrot.slane %v779_v15, 1 }
  0xfc   : > { %v583_v13 = vadd.f32 %v2051_v42, %v1782_v18  ;;  %v578_v58 = vrot.slane %v577_v39, 2  ;;  %v2052_v54 = vrot.slane %v1784_v28, 4  ;;  %v2053_v3 = vrot.slane %v1786_v19, 4 }
  0xfd   : > { %v775_v43 = vadd.f32 %v774_v2, %v773_v45  ;;  %v792_v17 = vsub.f32 %v785_v33, %v769_v57  ;;  %v820_v59 = vrot.slane %v804_v53, %v1576_v25  ;;  %v781_v47 = vadd.f32 %v780_v14, %v779_v15 }
  0xfe   : > { %v589_v51 = vadd.f32 %v2052_v54, %v1784_v28  ;;  %v584_v27 = vrot.slane %v583_v13, 2  ;;  %v579_v26 = vadd.f32 %v578_v58, %v577_v39  ;;  %v595_v18 = vadd.f32 %v2053_v3, %v1786_v19 }
  0xff   : > { %v793_v40 = vsub.f32 %v785_v33, %v775_v43  ;;  %v805_v34 = vcombine.low %v791_v16, %v792_v17  ;;  %v835_v38 = vcombine.low %v813_v31, %v820_v59  ;;  %v794_v35 = vsub.f32 %v785_v33, %v781_v47 }
 0x100   : > { %v590_v12 = vrot.slane %v589_v51, 2  ;;  %v585_v24 = vadd.f32 %v584_v27, %v583_v13  ;;  %v580_v41 = vrot.slane %v579_v26, 1  ;;  %v596_v28 = vrot.slane %v595_v18, 2 }
 0x101   : > { %v827_v48 = vrot.slane %v805_v34, %v1576_v25  ;;  %v843_v0 = vrot.slane %v835_v38, %v1576_v25  ;;  %v2054_v60 = vrot.slane %v1788_v29, 4  ;;  %v806_v36 = vcombine.low %v793_v40, %v794_v35 }
 0x102   : > { %v591_v7 = vadd.f32 %v590_v12, %v589_v51  ;;  %v586_v6 = vrot.slane %v585_v24, 1  ;;  %v581_v19 = vadd.f32 %v580_v41, %v579_v26  ;;  %v597_v10 = vadd.f32 %v596_v28, %v595_v18 }
 0x103   : > { %v601_v8 = vadd.f32 %v2054_v60, %v1788_v29  ;;  %v2055_v33 = vrot.slane %v1790_v21, 4  ;;  %v2056_v55 = vrot.slane %v1792_v30, 4  ;;  %v834_v20 = vrot.slane %v806_v36, %v1576_v25 }
 0x104   : > { %v592_v5 = vrot.slane %v591_v7, 1  ;;  %v587_v61 = vadd.f32 %v586_v6, %v585_v24  ;;  %v598_v50 = vrot.slane %v597_v10, 1  ;;  %v2057_v29 = vrot.slane %v1794_v22, 4 }
 0x105   : > { %v602_v11 = vrot.slane %v601_v8, 2  ;;  %v607_v4 = vadd.f32 %v2055_v33, %v1790_v21  ;;  %v613_v23 = vadd.f32 %v2056_v55, %v1792_v30  ;;  %v629_v44 = vsub.f32 %v627_v9, %v581_v19 }
 0x106   : > { %v593_v32 = vadd.f32 %v592_v5, %v591_v7  ;;  %v619_v62 = vadd.f32 %v2057_v29, %v1794_v22  ;;  %v836_v45 = vcombine.low %v827_v48, %v834_v20  ;;  %v599_v49 = vadd.f32 %v598_v50, %v597_v10 }
 0x107   : > { %v603_v63 = vadd.f32 %v602_v11, %v601_v8  ;;  %v608_v52 = vrot.slane %v607_v4, 2  ;;  %v614_v37 = vrot.slane %v613_v23, 2  ;;  %v630_v21 = vsub.f32 %v627_v9, %v587_v61 }
 0x108   : > { %v620_v46 = vrot.slane %v619_v62, 2  ;;  %v631_v30 = vsub.f32 %v627_v9, %v593_v32  ;;  %v850_v1 = vrot.slane %v836_v45, %v1576_v25  ;;  %v632_v57 = vsub.f32 %v627_v9, %v599_v49 }
 0x109   : > { %v604_v15 = vrot.slane %v603_v63, 1  ;;  %v609_v16 = vadd.f32 %v608_v52, %v607_v4  ;;  %v615_v56 = vadd.f32 %v614_v37, %v613_v23  ;;  %v645_v2 = vcombine.low %v629_v44, %v630_v21 }
 0x10a   : > { %v621_v39 = vadd.f32 %v620_v46, %v619_v62  ;;  %v851_v13 = vcombine.low %v843_v0, %v850_v1  ;;  %v646_v31 = vcombine.low %v631_v30, %v632_v57 }
 0x10b   : > { %v605_v53 = vadd.f32 %v604_v15, %v603_v63  ;;  %v610_v42 = vrot.slane %v609_v16, 1  ;;  %v616_v22 = vrot.slane %v615_v56, 1  ;;  %v655_v17 = vrot.slane %v645_v2, %v1576_v25 }
 0x10c   : > { %v622_v14 = vrot.slane %v621_v39, 1  ;;  %854 = vst [vmem:[#allocation2 + $0x3] ss:$4 sm:$0xff] %v851_v13  ;;  %v662_v59 = vrot.slane %v646_v31, %v1576_v25 }
 0x10d   : > { %v611_v58 = vadd.f32 %v610_v42, %v609_v16  ;;  %v617_v54 = vadd.f32 %v616_v22, %v615_v56  ;;  %v633_v51 = vsub.f32 %v627_v9, %v605_v53 }
 0x10e   : > { %v623_v43 = vadd.f32 %v622_v14, %v621_v39  ;;  %v677_v18 = vcombine.low %v655_v17, %v662_v59 }
 0x10f   : > { %v634_v27 = vsub.f32 %v627_v9, %v611_v58  ;;  %v635_v47 = vsub.f32 %v627_v9, %v617_v54 }
 0x110   : > { %v636_v26 = vsub.f32 %v627_v9, %v623_v43  ;;  %v685_v24 = vrot.slane %v677_v18, %v1576_v25 }
 0x111   : > { %v647_v12 = vcombine.low %v633_v51, %v634_v27 }
 0x112   : > { %v648_v3 = vcombine.low %v635_v47, %v636_v26 }
 0x113   : > { %v669_v40 = vrot.slane %v647_v12, %v1576_v25 }
 0x114   : > { %v676_v34 = vrot.slane %v648_v3, %v1576_v25 }
 0x116   : > { %v678_v38 = vcombine.low %v669_v40, %v676_v34 }
 0x118   : > { %v692_v35 = vrot.slane %v678_v38, %v1576_v25 }
 0x11a   : > { %v693_v41 = vcombine.low %v685_v24, %v692_v35 }
 0x11c   : > { %696 = vst [vmem:[#allocation2 + $0x2] ss:$4 sm:$0xff] %v693_v41 }
 0x123   : > { %v1908_v7 = vld [vmem:[#allocation2] sm:$0xff]  ;;  %v1910_v28 = vld [vmem:[#allocation2 + $0x8] sm:$0xff]  ;;  %v1912_v48 = vld [vmem:[#allocation2 + $0x10] sm:$0xff] }
 0x124   : > { %v1914_v0 = vld [vmem:[#allocation2 + $0x18] sm:$0xff]  ;;  %v863_v6 = vcombine.high %v1908_v7, %v1908_v7  ;;  %v864_v60 = vcombine.high %v1910_v28, %v1910_v28  ;;  %v865_v8 = vcombine.high %v1912_v48, %v1912_v48  ;;  %v872_v36 = vsel %vm871_vm0, %v1908_v7, -inf }
 0x125   : > { %v866_v9 = vcombine.high %v1914_v0, %v1914_v0  ;;  %v873_v19 = vrot.slane %v872_v36, 4  ;;  %v886_v5 = vsel %vm871_vm0, %v1910_v28, -inf  ;;  %v900_v10 = vsel %vm871_vm0, %v1912_v48, -inf }
 0x126   : > { %v879_v61 = vsel %vm871_vm0, %v863_v6, -inf  ;;  %v887_v11 = vrot.slane %v886_v5, 4  ;;  %v893_v33 = vsel %vm871_vm0, %v864_v60, -inf  ;;  %v901_v4 = vrot.slane %v900_v10, 4 }
 0x127   : > { %v874_v55 = vmax.f32 %v872_v36, %v873_v19  ;;  %v880_v23 = vrot.slane %v879_v61, 4  ;;  %v894_v20 = vrot.slane %v893_v33, 4  ;;  %v907_v32 = vsel %vm871_vm0, %v865_v8, -inf }
 0x128   : > { %v888_v50 = vmax.f32 %v886_v5, %v887_v11  ;;  %v902_v29 = vmax.f32 %v900_v10, %v901_v4  ;;  %v908_v62 = vrot.slane %v907_v32, 4  ;;  %v914_v63 = vsel %vm871_vm0, %v1914_v0, -inf }
 0x129   : > { %v875_v52 = vrot.slane %v874_v55, 2  ;;  %v881_v37 = vmax.f32 %v879_v61, %v880_v23  ;;  %v895_v44 = vmax.f32 %v893_v33, %v894_v20  ;;  %v915_v45 = vrot.slane %v914_v63, 4 }
 0x12a   : > { %v889_v49 = vrot.slane %v888_v50, 2  ;;  %v903_v46 = vrot.slane %v902_v29, 2  ;;  %v909_v21 = vmax.f32 %v907_v32, %v908_v62  ;;  %v921_v15 = vsel %vm871_vm0, %v866_v9, -inf }
 0x12b   : > { %v876_v16 = vmax.f32 %v874_v55, %v875_v52  ;;  %v882_v56 = vrot.slane %v881_v37, 2  ;;  %v896_v30 = vrot.slane %v895_v44, 2  ;;  %v916_v1 = vmax.f32 %v914_v63, %v915_v45 }
 0x12c   : > { %v890_v39 = vmax.f32 %v888_v50, %v889_v49  ;;  %v904_v57 = vmax.f32 %v902_v29, %v903_v46  ;;  %v910_v2 = vrot.slane %v909_v21, 2  ;;  %v922_v53 = vrot.slane %v921_v15, 4 }
 0x12d   : > { %v877_v42 = vrot.slane %v876_v16, 1  ;;  %v883_v22 = vmax.f32 %v881_v37, %v882_v56  ;;  %v897_v13 = vmax.f32 %v895_v44, %v896_v30  ;;  %v917_v14 = vrot.slane %v916_v1, 2 }
 0x12e   : > { %v891_v31 = vrot.slane %v890_v39, 1  ;;  %v905_v58 = vrot.slane %v904_v57, 1  ;;  %v911_v54 = vmax.f32 %v909_v21, %v910_v2  ;;  %v923_v51 = vmax.f32 %v921_v15, %v922_v53 }
 0x12f   : > { %v884_v43 = vrot.slane %v883_v22, 1  ;;  %v898_v17 = vrot.slane %v897_v13, 1  ;;  %v918_v59 = vmax.f32 %v916_v1, %v917_v14  ;;  %v1936_v26 = vmax.f32 %v876_v16, %v877_v42 }
 0x130   : > { %v912_v27 = vrot.slane %v911_v54, 1  ;;  %v924_v47 = vrot.slane %v923_v51, 2  ;;  %v1940_v3 = vmax.f32 %v890_v39, %v891_v31  ;;  %v1944_v40 = vmax.f32 %v904_v57, %v905_v58 }
 0x131   : > { %v1938_v12 = vmax.f32 %v883_v22, %v884_v43  ;;  %v1942_v18 = vmax.f32 %v897_v13, %v898_v17  ;;  %v919_v38 = vrot.slane %v918_v59, 1 }
 0x132   : > { %v1946_v34 = vmax.f32 %v911_v54, %v912_v27  ;;  %v925_v24 = vmax.f32 %v923_v51, %v924_v47 }
 0x133   : > { %v936_v35 = vcombine.low %v1936_v26, %v1938_v12  ;;  %v937_v41 = vcombine.low %v1940_v3, %v1942_v18  ;;  %v1956_v9 = vmax.f32 %v918_v59, %v919_v38 }
 0x134   : > { %v926_v6 = vrot.slane %v925_v24, 1  ;;  %v938_v60 = vcombine.low %v1944_v40, %v1946_v34 }
 0x135   : > { %v944_v8 = vsub.f32 %v1908_v7, %v936_v35  ;;  %v945_v36 = vsub.f32 %v1910_v28, %v937_v41 }
 0x136   : > { %v1958_v19 = vmax.f32 %v925_v24, %v926_v6  ;;  %v946_v5 = vsub.f32 %v1912_v48, %v938_v60 }
 0x137   : > { %v948_v10 = vmul.f32 1.442695, %v944_v8  ;;  %v950_v61 = vmul.f32 1.442695, %v945_v36 }
 0x138   : > { %v939_v11 = vcombine.low %v1956_v9, %v1958_v19  ;;  %v952_v33 = vmul.f32 1.442695, %v946_v5 }
 0x139   : > { %1272 = vpow2.f32 %v948_v10 }
 0x13a   : > { %v947_v4 = vsub.f32 %v1914_v0, %v939_v11  ;;  %1274 = vpow2.f32 %v950_v61 }
 0x13b   : > { %1276 = vpow2.f32 %v952_v33 }
 0x13c   : > { %v954_v7 = vmul.f32 1.442695, %v947_v4 }
 0x13e   : > { %1278 = vpow2.f32 %v954_v7 }
 0x146   : > { %v1273_v28 = vpop.eup %1272 }
 0x147   : > { %v1275_v55 = vpop.eup %1274  ;;  %v960_v23 = vcombine.high %v1273_v28, %v1273_v28  ;;  %v968_v20 = vsel %vm871_vm0, %v1273_v28, 0.0 }
 0x148   : > { %v1277_v32 = vpop.eup %1276  ;;  %v961_v48 = vcombine.high %v1275_v55, %v1275_v55  ;;  %v969_v50 = vrot.slane %v968_v20, 4  ;;  %v982_v29 = vsel %vm871_vm0, %v1275_v55, 0.0 }
 0x149   : > { %v962_v62 = vcombine.high %v1277_v32, %v1277_v32  ;;  %v975_v63 = vsel %vm871_vm0, %v960_v23, 0.0  ;;  %v983_v52 = vrot.slane %v982_v29, 4  ;;  %v996_v0 = vsel %vm871_vm0, %v1277_v32, 0.0 }
 0x14a   : > { %v970_v37 = vadd.f32 %v969_v50, %v968_v20  ;;  %v976_v44 = vrot.slane %v975_v63, 4  ;;  %v989_v45 = vsel %vm871_vm0, %v961_v48, 0.0  ;;  %v997_v49 = vrot.slane %v996_v0, 4 }
 0x14b   : > { %v1279_v46 = vpop.eup %1278  ;;  %v984_v21 = vadd.f32 %v983_v52, %v982_v29  ;;  %v990_v15 = vrot.slane %v989_v45, 4  ;;  %v1003_v16 = vsel %vm871_vm0, %v962_v62, 0.0 }
 0x14c   : > { %v963_v56 = vcombine.high %v1279_v46, %v1279_v46  ;;  %v971_v30 = vrot.slane %v970_v37, 2  ;;  %v977_v1 = vadd.f32 %v976_v44, %v975_v63  ;;  %v998_v39 = vadd.f32 %v997_v49, %v996_v0 }
 0x14d   : > { %v985_v57 = vrot.slane %v984_v21, 2  ;;  %v991_v2 = vadd.f32 %v990_v15, %v989_v45  ;;  %v1004_v53 = vrot.slane %v1003_v16, 4  ;;  %v1010_v42 = vsel %vm871_vm0, %v1279_v46, 0.0 }
 0x14e   : > { %v972_v22 = vadd.f32 %v971_v30, %v970_v37  ;;  %v978_v13 = vrot.slane %v977_v1, 2  ;;  %v999_v14 = vrot.slane %v998_v39, 2  ;;  %v1011_v31 = vrot.slane %v1010_v42, 4 }
 0x14f   : > { %v986_v58 = vadd.f32 %v985_v57, %v984_v21  ;;  %v992_v54 = vrot.slane %v991_v2, 2  ;;  %v1005_v51 = vadd.f32 %v1004_v53, %v1003_v16  ;;  %v1017_v43 = vsel %vm871_vm0, %v963_v56, 0.0 }
 0x150   : > { %v973_v17 = vrot.slane %v972_v22, 1  ;;  %v979_v59 = vadd.f32 %v978_v13, %v977_v1  ;;  %v1000_v27 = vadd.f32 %v999_v14, %v998_v39  ;;  %v1012_v47 = vadd.f32 %v1011_v31, %v1010_v42 }
 0x151   : > { %v987_v38 = vrot.slane %v986_v58, 1  ;;  %v993_v24 = vadd.f32 %v992_v54, %v991_v2  ;;  %v1006_v35 = vrot.slane %v1005_v51, 2  ;;  %v1018_v41 = vrot.slane %v1017_v43, 4 }
 0x152   : > { %v974_v6 = vadd.f32 %v973_v17, %v972_v22  ;;  %v980_v60 = vrot.slane %v979_v59, 1  ;;  %v1001_v8 = vrot.slane %v1000_v27, 1  ;;  %v1013_v36 = vrot.slane %v1012_v47, 2 }
 0x153   : > { %v988_v5 = vadd.f32 %v987_v38, %v986_v58  ;;  %v994_v10 = vrot.slane %v993_v24, 1  ;;  %v1007_v61 = vadd.f32 %v1006_v35, %v1005_v51  ;;  %v1019_v11 = vadd.f32 %v1018_v41, %v1017_v43 }
 0x154   : > { %v981_v33 = vadd.f32 %v980_v60, %v979_v59  ;;  %v1002_v4 = vadd.f32 %v1001_v8, %v1000_v27  ;;  %v1014_v7 = vadd.f32 %v1013_v36, %v1012_v47  ;;  %1280 = vlog2.f32 %v974_v6 }
 0x155   : > { %v995_v28 = vadd.f32 %v994_v10, %v993_v24  ;;  %v1008_v55 = vrot.slane %v1007_v61, 1  ;;  %v1020_v23 = vrot.slane %v1019_v11, 2  ;;  %1282 = vlog2.f32 %v988_v5 }
 0x156   : > { %v1015_v20 = vrot.slane %v1014_v7, 1  ;;  %1284 = vlog2.f32 %v981_v33 }
 0x157   : > { %v1009_v32 = vadd.f32 %v1008_v55, %v1007_v61  ;;  %v1021_v48 = vadd.f32 %v1020_v23, %v1019_v11  ;;  %1286 = vlog2.f32 %v995_v28 }
 0x158   : > { %v1016_v50 = vadd.f32 %v1015_v20, %v1014_v7  ;;  %1288 = vlog2.f32 %v1002_v4 }
 0x159   : > { %v1022_v29 = vrot.slane %v1021_v48, 1  ;;  %1290 = vlog2.f32 %v1009_v32 }
 0x15a   : > { %1292 = vlog2.f32 %v1016_v50 }
 0x15b   : > { %v1023_v62 = vadd.f32 %v1022_v29, %v1021_v48 }
 0x15d   : > { %1294 = vlog2.f32 %v1023_v62 }
 0x161   : > { %v1281_v63 = vpop.eup %1280 }
 0x162   : > { %v1283_v52 = vpop.eup %1282  ;;  %v1025_v0 = vmul.f32 0.6931472, %v1281_v63 }
 0x163   : > { %v1285_v37 = vpop.eup %1284  ;;  %v1029_v44 = vmul.f32 0.6931472, %v1283_v52 }
 0x164   : > { %v1287_v45 = vpop.eup %1286  ;;  %v1027_v49 = vmul.f32 0.6931472, %v1285_v37  ;;  %v1040_v56 = vadd.f32 %v1025_v0, %v1936_v26 }
 0x165   : > { %v1289_v46 = vpop.eup %1288  ;;  %v1031_v21 = vmul.f32 0.6931472, %v1287_v45  ;;  %v1042_v57 = vadd.f32 %v1029_v44, %v1940_v3 }
 0x166   : > { %v1291_v15 = vpop.eup %1290  ;;  %v1033_v16 = vmul.f32 0.6931472, %v1289_v46  ;;  %v1041_v30 = vadd.f32 %v1027_v49, %v1938_v12 }
 0x167   : > { %v1293_v1 = vpop.eup %1292  ;;  %v1035_v39 = vmul.f32 0.6931472, %v1291_v15  ;;  %v1043_v2 = vadd.f32 %v1031_v21, %v1942_v18 }
 0x168   : > { %v1056_v53 = vcombine.low %v1040_v56, %v1041_v30  ;;  %v1037_v42 = vmul.f32 0.6931472, %v1293_v1  ;;  %v1044_v22 = vadd.f32 %v1033_v16, %v1944_v40 }
 0x169   : > { %v1045_v13 = vadd.f32 %v1035_v39, %v1946_v34  ;;  %v1057_v14 = vcombine.low %v1042_v57, %v1043_v2 }
 0x16a   : > { %v1295_v31 = vpop.eup %1294  ;;  %v1066_v12 = vrot.slane %v1056_v53, %v1576_v25  ;;  %v1046_v51 = vadd.f32 %v1037_v42, %v1956_v9 }
 0x16b   : > { %v1039_v58 = vmul.f32 0.6931472, %v1295_v31  ;;  %v1058_v26 = vcombine.low %v1044_v22, %v1045_v13  ;;  %v1073_v54 = vrot.slane %v1057_v14, %v1576_v25 }
 0x16d   : > { %v1047_v3 = vadd.f32 %v1039_v58, %v1958_v19  ;;  %v1080_v40 = vrot.slane %v1058_v26, %v1576_v25  ;;  %v1088_v34 = vcombine.low %v1066_v12, %v1073_v54 }
 0x16f   : > { %v1059_v18 = vcombine.low %v1046_v51, %v1047_v3  ;;  %v1096_v59 = vrot.slane %v1088_v34, %v1576_v25 }
 0x171   : > { %v1087_v43 = vrot.slane %v1059_v18, %v1576_v25 }
 0x173   : > { %v1089_v17 = vcombine.low %v1080_v40, %v1087_v43 }
 0x175   : > { %v1103_v27 = vrot.slane %v1089_v17, %v1576_v25 }
 0x177   : > { %v1104_v9 = vcombine.low %v1096_v59, %v1103_v27 }
 0x179   : > { %1106 = vst [vmem:[%s213_s13] sm:$0xff] %v1104_v9 }
 0x17a   : > { %1337 = shalt.err (!%p1334_p10)
}
 0x17b   : > { %s1338_s23 = scalar_lea.hbm %s1120_s11, 128  ;;  %s1342_s29 = scalar_lea.hbm %s2026_s4, 256 }
 0x17c   : > { %p1339_p2 = scmp.ne.s32.totalorder %s1120_s11, %s1338_s23  ;;  %p1343_p7 = scmp.lt.s32.totalorder %s1120_s11, %s2026_s4 }
 0x17d   : > { %p1344_p0 = scmp.lt.s32.totalorder %s1342_s29, %s1338_s23 }
 0x17e   : > { %p1340_p4 = pnand %p1339_p2, %p2058_p12 }
 0x17f   : > { %p1345_p6 = por %p1344_p0, %p1343_p7 }
 0x180   : > { %p1341_p9 = pneg %p1340_p4 }
 0x182   : > { %p1346_p11 = pnand %p1345_p6, %p1341_p9 }
 0x184   : > { %1349 = shalt.err (!%p1346_p11)
}
 0x185   : > { %1210 = dma.vmem_to_hbm [thread:$0]  (%p2058_p12), %s1123_s14, 128, %s1120_s11, %s1108_s12  }
 0x186 PF: > { %s1134_s6 = sand.u32 1, %s1376_s15   ;;  %p2059_p13 = scmp.ne.s32.totalorder %s2032_s28, 0 }
 0x187   : > { %p2060_p1 = scmp.ge.s32.totalorder %s1388_s18, 2  ;;  %s1135_s9 = scalar_lea.sflag [#allocation5], %s1134_s6 }
 0x189   : > { %p1217_p3 = pnand %p2060_p1, %p2059_p13 }
 0x18b   : > { %p1218_p5 = pneg %p1217_p3 }
 0x18d   : > { %1371 = dma.done.wait (%p1218_p5), %s1135_s9, 128  }
 0x18e   : > { %1373 = vsyncadd (%p1218_p5), %s1135_s9, 4294967168  ;;  %p17_p8 = scmp.ge.s32.totalorder %s1447_s21, 4   ;;  %s2061_s15 = smov %s1380_s16 }
 0x18f   : > { %s2062_s16 = smov %s1384_s17  ;;  %s2063_s17 = smov %s1459_s24 }
 0x190   : > { %s2064_s18 = smov %s1447_s21  ;;  %19 = sbr.rel (!%p17_p8) target bundleno = 5 (0x5), region = 84 }
 0x195   :  { %1140 = vsyncpa [#allocation4], 1 }
 0x196   :  { %1142 = vsyncpa [#allocation4 + $0x1], 1 }
 0x197   :  { %1143 = vsyncpa [#allocation5], 1 }
 0x198   :  { %1145 = vsyncpa [#allocation5 + $0x1], 1 }

</bundles_post_ra>
